<compile_context>
chip_gen: v6e
topology: v6e:2x2x1
jax: 0.10.0
libtpu: 0.0.40
codegen_flags: <defaults>
</compile_context>

<pallas_src>
import jax
import jax.numpy as jnp
from jax.experimental import pallas as pl
from jax.experimental.pallas import tpu as pltpu

N, C, H, W = 7, 16, 8, 8          # dim 0 must be 7 so split([3, 4], dim=0) is valid
SPLIT_SIZES = (3, 4)              # torch.split(x, [3, 4], dim=0)


def _copy_kernel(x_ref, o_ref):
    # transpose(1,2) o cat(split(dim0)) o transpose(1,2) with the statically-derived
    # identity permutation reduces to a single whole-tensor copy on the lane-dense
    # flattened view. Single grid step, unmasked full-width vector stores.
    o_ref[...] = x_ref[...]


def _split_cat_permutation(n):
    # Output-slice -> source-slice map induced by split(SPLIT_SIZES, dim=0) followed
    # by concatenation of the pieces along dim 0. Computed in Python at trace time
    # (mirrors the split/cat structure of the PyTorch forward); it is the identity.
    starts, acc = [], 0
    for s in SPLIT_SIZES:
        starts.append(acc)
        acc += s
    perm = []
    for k, s in enumerate(SPLIT_SIZES):
        perm.extend(range(starts[k], starts[k] + s))
    assert acc == n
    return tuple(perm)


def model_forward(v1):
    n, c, h, w = v1.shape
    assert n == sum(SPLIT_SIZES)

    perm = _split_cat_permutation(n)
    # Statically the identity; if it were not, we would reorder dim-0 slices here
    # (trace-time, free) before the single-block copy.
    assert perm == tuple(range(n))

    # Lane-dense view: last dim = C*H*W = 1024 (multiple of 128), one block = whole
    # array, no grid -> single kernel invocation, one contiguous DMA each way.
    flat = v1.reshape(n, c * h * w)

    out_flat = pl.pallas_call(
        _copy_kernel,
        out_shape=jax.ShapeDtypeStruct(flat.shape, flat.dtype),
        in_specs=[pl.BlockSpec(memory_space=pltpu.MemorySpace.VMEM)],
        out_specs=pl.BlockSpec(memory_space=pltpu.MemorySpace.VMEM),
    )(flat)

    return out_flat.reshape(n, c, h, w)


def model_forward_ref(v1):
    # Pure-JAX reference of the corrected semantics (see TODO above).
    x = jnp.swapaxes(v1, 1, 2)
    parts = (x[:SPLIT_SIZES[0]], x[SPLIT_SIZES[0]:])
    y = jnp.concatenate(parts, axis=0)
    return jnp.swapaxes(y, 1, 2)


def init_params(key):
    # Deterministic parameter init matching the PyTorch __init__ shapes.
    # These parameters are NOT used by forward (same as in the PyTorch module).
    k1, k2, k3, k4 = jax.random.split(key, 4)
    return {
        "conv1": {"w": 0.1 * jax.random.normal(k1, (2, 16, 2, 2), jnp.float32),
                  "b": 0.1 * jax.random.normal(k2, (2,), jnp.float32)},
        "conv2": {"w": 0.1 * jax.random.normal(k3, (4, 2, 2, 2), jnp.float32),
                  "b": 0.1 * jax.random.normal(k4, (4,), jnp.float32)},
    }


if __name__ == "__main__":
    root = jax.random.PRNGKey(0)
    k_params, k_input = jax.random.split(root)

    params = init_params(k_params)  # dead parameters, kept for module parity
    v1 = jax.random.normal(k_input, (N, C, H, W), jnp.float32)

    out = model_forward(v1)
    out = jax.block_until_ready(out)

    ref = model_forward_ref(v1)
    assert out.shape == (N, C, H, W), out.shape
    assert out.dtype == v1.dtype
    assert jnp.allclose(out, ref), "Pallas kernel mismatch vs reference"

    print("KERNEL_OK")
</pallas_src>

<mosaic_0001>
module attributes {stable_mosaic.version = 11 : i64} {
  func.func @_copy_kernel(%arg0: memref<7x1024xf32, #tpu.memory_space<vmem>>, %arg1: memref<7x1024xf32, #tpu.memory_space<vmem>>) attributes {dimension_semantics = [], scalar_prefetch = 0 : i64, scratch_operands = 0 : i64, tpu.core_type = #tpu.core_type<tc>} {
    %c0 = arith.constant 0 : index
    %c0_0 = arith.constant 0 : index
    %0 = vector.load %arg0[%c0, %c0_0] : memref<7x1024xf32, #tpu.memory_space<vmem>>, vector<7x1024xf32>
    %c0_1 = arith.constant 0 : index
    %c0_2 = arith.constant 0 : index
    %1 = vector.load %arg1[%c0_1, %c0_2] : memref<7x1024xf32, #tpu.memory_space<vmem>>, vector<7x1024xf32>
    tpu.vector_store %arg1[%c0_1, %c0_2], %0 {strides = array<i32>} : memref<7x1024xf32, #tpu.memory_space<vmem>>, vector<7x1024xf32>,
    return
  }
}

</mosaic_0001>

<bundles_post_ra>
// kernel: tpu_custom_call.1
= control target key start
LH: loop header
LB: loop body
LE: loop exit
PB: predicated region body
PF: predicated region fallthrough
CT: control target
= control target key end

     0   :  { %6 = vsyncpa [#allocation3], 0  ;;  %s116_s0 = inlined_call_operand.hbm [shape: f32[7,1024], index: 0, kind: input, shape index: {}]   ;;  %s117_s1 = inlined_call_operand.hbm [shape: f32[7,1024], index: 1, kind: output, shape index: {}]  }
   0x1   :  { %7 = vsyncpa [#allocation4], 0  ;;  %s98_s6 = smov [#allocation2]  }
   0x2   :  { %s14_s7 = sshll.u32 %s98_s6, 4  ;;  %s15_s7 = int_to_ptr.vmem [resolvable:$true] %s14_s7 }
   0x3   :  { %s62_s8 = scalar_lea.vmem %s15_s7, 1024  ;;  %p67_p1 = scmp.lt.s32.totalorder %s15_s7, %s15_s7 }
   0x4   :  { %p63_p0 = scmp.ne.s32.totalorder %s15_s7, %s62_s8  ;;  %p68_p2 = scmp.lt.s32.totalorder %s62_s8, %s62_s8 }
   0x6   :  { %p69_p3 = por %p68_p2, %p67_p1 }
   0x8   :  { %p70_p4 = pnand %p69_p3, %p63_p0 }
   0xa   :  { %73 = shalt.err (!%p70_p4)
}
   0xb   :  { %17 = dma.hbm_to_vmem [thread:$0]  %s116_s0, 1024, %s15_s7, [#allocation3]  }
   0xc   :  { %94 = dma.done.wait [#allocation3], 1024  }
   0xd   :  { %95 = vsyncadd [#allocation3], 4294966272  ;;  %s99_s11 = smov [#allocation5]   ;;  %v21_v0 = vld [vmem:[#allocation2] sm:$0x7f] }
   0xe   :  { %s43_s12 = sshll.u32 %s99_s11, 4  ;;  %v22_v1 = vld [vmem:[#allocation2 + $0x8] sm:$0x7f]  ;;  %v23_v2 = vld [vmem:[#allocation2 + $0x10] sm:$0x7f]  ;;  %s44_s12 = int_to_ptr.vmem [resolvable:$true] %s43_s12 }
   0xf   :  { %29 = vst [vmem:[#allocation5] sm:$0x7f] %v21_v0  ;;  %30 = vst [vmem:[#allocation5 + $0x8] sm:$0x7f] %v22_v1  ;;  %v24_v3 = vld [vmem:[#allocation2 + $0x18] sm:$0x7f]  ;;  %p79_p6 = scmp.lt.s32.totalorder %s44_s12, %s44_s12 }
  0x10   :  { %31 = vst [vmem:[#allocation5 + $0x10] sm:$0x7f] %v23_v2  ;;  %v25_v4 = vld [vmem:[#allocation2 + $0x20] sm:$0x7f]  ;;  %v26_v5 = vld [vmem:[#allocation2 + $0x28] sm:$0x7f] }
  0x11   :  { %32 = vst [vmem:[#allocation5 + $0x18] sm:$0x7f] %v24_v3  ;;  %33 = vst [vmem:[#allocation5 + $0x20] sm:$0x7f] %v25_v4  ;;  %v27_v6 = vld [vmem:[#allocation2 + $0x30] sm:$0x7f] }
  0x12   :  { %34 = vst [vmem:[#allocation5 + $0x28] sm:$0x7f] %v26_v5  ;;  %v28_v7 = vld [vmem:[#allocation2 + $0x38] sm:$0x7f]  ;;  %35 = vst [vmem:[#allocation5 + $0x30] sm:$0x7f] %v27_v6 }
  0x13   :  { %36 = vst [vmem:[#allocation5 + $0x38] sm:$0x7f] %v28_v7  ;;  %s74_s0 = scalar_lea.vmem %s44_s12, 1024 }
  0x14   :  { %p75_p5 = scmp.ne.s32.totalorder %s44_s12, %s74_s0  ;;  %p80_p7 = scmp.lt.s32.totalorder %s74_s0, %s74_s0 }
  0x16   :  { %p81_p8 = por %p80_p7, %p79_p6 }
  0x18   :  { %p82_p9 = pnand %p81_p8, %p75_p5 }
  0x1a   :  { %85 = shalt.err (!%p82_p9)
}
  0x1b   :  { %46 = dma.vmem_to_hbm [thread:$0]  %s44_s12, 1024, %s117_s1, [#allocation4]  }
  0x1c   :  { %96 = dma.done.wait [#allocation4], 1024  }
  0x1d   :  { %97 = vsyncadd [#allocation4], 4294966272 }
  0x1e   :  { %50 = vsyncpa [#allocation3], 1 }
  0x1f   :  { %51 = vsyncpa [#allocation4], 1 }

</bundles_post_ra>
